<compile_context>
chip_gen: v7x
topology: tpu7x:2x2x1
jax: 0.10.0
libtpu: 0.0.40
codegen_flags: <defaults>
</compile_context>

<pallas_src>
import functools
import math

import jax
import jax.numpy as jnp
from jax import lax
from jax.experimental import pallas as pl
from jax.experimental.pallas import tpu as pltpu


def _round_up(x, m):
    return (x + m - 1) // m * m


def _supcon_kernel(q_emb_ref, k_emb_ref, q_lab_ref, k_lab_ref, out_ref,
                   denom_ref, pos_sum_ref, pos_cnt_ref,
                   *, inv_temp, batch_size, block_q, block_k):
    j = pl.program_id(1)                      # column-tile index (reduction axis)

    @pl.when(j == 0)
    def _init():
        denom_ref[...] = jnp.zeros_like(denom_ref)
        pos_sum_ref[...] = jnp.zeros_like(pos_sum_ref)
        pos_cnt_ref[...] = jnp.zeros_like(pos_cnt_ref)

    # L2-normalize rows; fold 1/sqrt(temperature) into both operands so the
    # Gram matrix comes out already scaled by 1/temperature.
    scale = float(inv_temp) ** 0.5
    q = q_emb_ref[...].astype(jnp.float32)                     # (bq, D)
    k = k_emb_ref[...].astype(jnp.float32)                     # (bk, D)
    q_ss = jnp.sum(q * q, axis=1, keepdims=True)
    k_ss = jnp.sum(k * k, axis=1, keepdims=True)
    # F.normalize(p=2, eps=1e-12): 1/max(||x||, 1e-12) == min(rsqrt(||x||^2), 1e12)
    q_inv = jnp.minimum(lax.rsqrt(q_ss), 1e12) * scale
    k_inv = jnp.minimum(lax.rsqrt(k_ss), 1e12) * scale
    qn = q * q_inv
    kn = k * k_inv
    if q_emb_ref.dtype == jnp.bfloat16:
        # bf16 x bf16 -> f32 runs at full MXU rate; accumulation stays f32.
        qn = qn.astype(jnp.bfloat16)
        kn = kn.astype(jnp.bfloat16)

    # (bq, bk) similarity tile on the MXU; contract both operands on D
    # (no transpose, no extra VMEM temporary).
    s = lax.dot_general(qn, kn, dimension_numbers=(((1,), (1,)), ((), ())),
                        preferred_element_type=jnp.float32)

    # Row max of the full similarity matrix is the diagonal self-similarity
    # == 1/temperature (unit-norm rows). A per-row constant shift cancels
    # exactly in the loss, so subtract the constant; logits <= ~0, exp stable.
    logits = s - inv_temp

    # Masks built on the fly (no B x B f32 mask tensors materialized).
    r = pl.program_id(0) * block_q + lax.broadcasted_iota(
        jnp.int32, (block_q, block_k), 0)
    c = j * block_k + lax.broadcasted_iota(jnp.int32, (block_q, block_k), 1)
    keep = jnp.logical_and(r != c, c < batch_size)      # off-diagonal & unpadded
    pos = jnp.logical_and(q_lab_ref[...] == k_lab_ref[...], keep)

    exp_l = jnp.where(keep, jnp.exp(logits), 0.0)
    denom_ref[...] += jnp.sum(exp_l, axis=1, keepdims=True)
    pos_sum_ref[...] += jnp.sum(jnp.where(pos, logits, 0.0), axis=1, keepdims=True)
    pos_cnt_ref[...] += jnp.sum(pos.astype(jnp.float32), axis=1, keepdims=True)

    # Finalize: per-anchor loss = log(sum exp) - mean_pos(logits); 0 if no
    # positives (matches the reference's mask_sum==0 -> 1 guard).
    @pl.when(j == pl.num_programs(1) - 1)
    def _finalize():
        cnt = pos_cnt_ref[...]
        safe_cnt = jnp.where(cnt > 0.0, cnt, 1.0)
        mean_pos = pos_sum_ref[...] * pl.reciprocal(safe_cnt, approx=False)
        per_anchor = jnp.log(denom_ref[...]) - mean_pos
        out_ref[...] = jnp.where(cnt > 0.0, per_anchor, 0.0)


def supcon_loss_plms(batch_emb, labels, temperature=0.05,
                     block_q=256, block_k=512):
    """Pallas implementation of SupConLossPLMS.forward. Returns a scalar loss."""
    B, D = batch_emb.shape

    # Tile sizes: clamp to the (sublane-padded) batch and make block_k a
    # multiple of block_q so one padded batch size serves both grid axes.
    bq = min(block_q, _round_up(B, 8))
    bk = min(block_k, _round_up(B, 8))
    if bk > bq:
        bk = (bk // bq) * bq
    lcm = bq * bk // math.gcd(bq, bk)
    bp = _round_up(B, lcm)

    emb = batch_emb                               # keep native dtype (bf16 or f32)
    lab = labels.reshape(-1).astype(jnp.int32)
    if bp != B:
        emb = jnp.pad(emb, ((0, bp - B), (0, 0)))
        lab = jnp.pad(lab, (0, bp - B), constant_values=-1)
    lab_col = lab.reshape(bp, 1)                  # anchor labels (sublane axis)
    lab_row = lab.reshape(1, bp)                  # contrast labels (lane-dense)

    grid = (bp // bq, bp // bk)
    kernel = functools.partial(
        _supcon_kernel, inv_temp=1.0 / temperature, batch_size=B,
        block_q=bq, block_k=bk)

    per_anchor = pl.pallas_call(
        kernel,
        out_shape=jax.ShapeDtypeStruct((bp, 1), jnp.float32),
        grid_spec=pltpu.PrefetchScalarGridSpec(
            num_scalar_prefetch=0,
            grid=grid,
            in_specs=[
                pl.BlockSpec((bq, D), lambda i, j: (i, 0)),   # anchor rows
                pl.BlockSpec((bk, D), lambda i, j: (j, 0)),   # contrast rows
                pl.BlockSpec((bq, 1), lambda i, j: (i, 0)),   # anchor labels
                pl.BlockSpec((1, bk), lambda i, j: (0, j)),   # contrast labels
            ],
            out_specs=pl.BlockSpec((bq, 1), lambda i, j: (i, 0)),
            scratch_shapes=[pltpu.VMEM((bq, 1), jnp.float32)] * 3,
        ),
        compiler_params=pltpu.CompilerParams(
            dimension_semantics=("parallel", "arbitrary")),
    )(emb, emb, lab_col, lab_row)

    # Tiny B-element reduction; rows are independent so it stays outside the
    # core-parallel kernel.
    return jnp.mean(per_anchor[:B, 0])


def _reference_loss(batch_emb, labels, temperature=0.05):
    """Pure-JAX mirror of the PyTorch forward, for a sanity check."""
    labels = labels.reshape(-1, 1)
    B = batch_emb.shape[0]
    mask = (labels == labels.T).astype(jnp.float32)
    norm = batch_emb / jnp.maximum(
        jnp.linalg.norm(batch_emb, axis=1, keepdims=True), 1e-12)
    dot = (norm @ norm.T) / temperature
    logits = dot - jnp.max(dot, axis=1, keepdims=True)
    logits_mask = 1.0 - jnp.eye(B, dtype=jnp.float32)
    mask = mask * logits_mask
    exp_logits = jnp.exp(logits) * logits_mask
    log_prob = logits - jnp.log(jnp.sum(exp_logits, axis=1, keepdims=True))
    mask_sum = jnp.sum(mask, axis=1)
    mask_sum = jnp.where(mask_sum == 0, 1.0, mask_sum)
    mean_log_prob_pos = -jnp.sum(mask * log_prob, axis=1) / mask_sum
    return jnp.mean(mean_log_prob_pos)


if __name__ == "__main__":
    key = jax.random.PRNGKey(0)
    k_emb, k_lab = jax.random.split(key)

    B, D = 8, 32                      # small batch of sentence embeddings
    batch_emb = jax.random.normal(k_emb, (B, D), dtype=jnp.float32)
    labels = jax.random.randint(k_lab, (B,), 0, 3, dtype=jnp.int32)

    loss = supcon_loss_plms(batch_emb, labels, temperature=0.05)
    loss = jax.block_until_ready(loss)

    ref = _reference_loss(batch_emb, labels, temperature=0.05)
    assert jnp.allclose(loss, ref, rtol=1e-4, atol=1e-4), (loss, ref)

    print("KERNEL_OK")
</pallas_src>

<mosaic_0001>
module attributes {stable_mosaic.version = 11 : i64} {
  func.func @_supcon_kernel(%arg0: i32, %arg1: i32, %arg2: memref<8x32xf32, #tpu.memory_space<vmem>>, %arg3: memref<8x32xf32, #tpu.memory_space<vmem>>, %arg4: memref<8x1xi32, #tpu.memory_space<vmem>>, %arg5: memref<1x8xi32, #tpu.memory_space<vmem>>, %arg6: memref<8x1xf32, #tpu.memory_space<vmem>>, %arg7: memref<8x1xf32, #tpu.memory_space<vmem>>, %arg8: memref<8x1xf32, #tpu.memory_space<vmem>>, %arg9: memref<8x1xf32, #tpu.memory_space<vmem>>) attributes {dimension_semantics = [#tpu.dimension_semantics<parallel>, #tpu.dimension_semantics<arbitrary>], iteration_bounds = array<i64: 1, 1>, scalar_prefetch = 0 : i64, scratch_operands = 3 : i64, tpu.core_type = #tpu.core_type<tc>, window_params = [{transform_indices = @transform_0, window_bounds = array<i64: 8, 32>}, {transform_indices = @transform_1, window_bounds = array<i64: 8, 32>}, {transform_indices = @transform_2, window_bounds = array<i64: 8, 1>}, {transform_indices = @transform_3, window_bounds = array<i64: 1, 8>}, {transform_indices = @transform_4, window_bounds = array<i64: 8, 1>}]} {
    %c0_i32 = arith.constant 0 : i32
    %0 = arith.cmpi eq, %arg1, %c0_i32 : i32
    %1 = arith.extui %0 : i1 to i32
    %c0_i32_0 = arith.constant 0 : i32
    %2 = arith.cmpi ne, %1, %c0_i32_0 : i32
    scf.if %2 {
      %cst_36 = arith.constant 0.000000e+00 : f32
      %71 = vector.broadcast %cst_36 : f32 to vector<8x1xf32>
      %c0_37 = arith.constant 0 : index
      %c0_38 = arith.constant 0 : index
      %72 = vector.load %arg7[%c0_37, %c0_38] : memref<8x1xf32, #tpu.memory_space<vmem>>, vector<8x1xf32>
      tpu.vector_store %arg7[%c0_37, %c0_38], %71 {strides = array<i32>} : memref<8x1xf32, #tpu.memory_space<vmem>>, vector<8x1xf32>,
      %cst_39 = arith.constant 0.000000e+00 : f32
      %73 = vector.broadcast %cst_39 : f32 to vector<8x1xf32>
      %c0_40 = arith.constant 0 : index
      %c0_41 = arith.constant 0 : index
      %74 = vector.load %arg8[%c0_40, %c0_41] : memref<8x1xf32, #tpu.memory_space<vmem>>, vector<8x1xf32>
      tpu.vector_store %arg8[%c0_40, %c0_41], %73 {strides = array<i32>} : memref<8x1xf32, #tpu.memory_space<vmem>>, vector<8x1xf32>,
      %cst_42 = arith.constant 0.000000e+00 : f32
      %75 = vector.broadcast %cst_42 : f32 to vector<8x1xf32>
      %c0_43 = arith.constant 0 : index
      %c0_44 = arith.constant 0 : index
      %76 = vector.load %arg9[%c0_43, %c0_44] : memref<8x1xf32, #tpu.memory_space<vmem>>, vector<8x1xf32>
      tpu.vector_store %arg9[%c0_43, %c0_44], %75 {strides = array<i32>} : memref<8x1xf32, #tpu.memory_space<vmem>>, vector<8x1xf32>,
    } else {
    }
    %c0 = arith.constant 0 : index
    %c0_1 = arith.constant 0 : index
    %3 = vector.load %arg2[%c0, %c0_1] : memref<8x32xf32, #tpu.memory_space<vmem>>, vector<8x32xf32>
    %c0_2 = arith.constant 0 : index
    %c0_3 = arith.constant 0 : index
    %4 = vector.load %arg3[%c0_2, %c0_3] : memref<8x32xf32, #tpu.memory_space<vmem>>, vector<8x32xf32>
    %5 = arith.mulf %3, %3 : vector<8x32xf32>
    %cst = arith.constant dense<0.000000e+00> : vector<8xf32>
    %6 = vector.multi_reduction <add>, %5, %cst [1] : vector<8x32xf32> to vector<8xf32>
    %7 = vector.shape_cast %6 : vector<8xf32> to vector<8x1xf32>
    %8 = arith.mulf %4, %4 : vector<8x32xf32>
    %cst_4 = arith.constant dense<0.000000e+00> : vector<8xf32>
    %9 = vector.multi_reduction <add>, %8, %cst_4 [1] : vector<8x32xf32> to vector<8xf32>
    %10 = vector.shape_cast %9 : vector<8xf32> to vector<8x1xf32>
    %11 = math.rsqrt %7 : vector<8x1xf32>
    %cst_5 = arith.constant 9.99999995E+11 : f32
    %12 = vector.broadcast %cst_5 : f32 to vector<8x1xf32>
    %13 = arith.minimumf %11, %12 : vector<8x1xf32>
    %cst_6 = arith.constant 4.47213602 : f32
    %14 = vector.broadcast %cst_6 : f32 to vector<8x1xf32>
    %15 = arith.mulf %13, %14 : vector<8x1xf32>
    %16 = math.rsqrt %10 : vector<8x1xf32>
    %cst_7 = arith.constant 9.99999995E+11 : f32
    %17 = vector.broadcast %cst_7 : f32 to vector<8x1xf32>
    %18 = arith.minimumf %16, %17 : vector<8x1xf32>
    %cst_8 = arith.constant 4.47213602 : f32
    %19 = vector.broadcast %cst_8 : f32 to vector<8x1xf32>
    %20 = arith.mulf %18, %19 : vector<8x1xf32>
    %21 = vector.broadcast %15 : vector<8x1xf32> to vector<8x32xf32>
    %22 = arith.mulf %3, %21 : vector<8x32xf32>
    %23 = vector.broadcast %20 : vector<8x1xf32> to vector<8x32xf32>
    %24 = arith.mulf %4, %23 : vector<8x32xf32>
    %cst_9 = arith.constant dense<0.000000e+00> : vector<8x8xf32>
    %25 = tpu.matmul %22, %24, %cst_9 {dimension_numbers = #tpu.dot_dimension_numbers<[1], [1], [0], [0], [0, 0, 1, 0], [], []>} : vector<8x32xf32>, vector<8x32xf32>, vector<8x8xf32> -> vector<8x8xf32>
    %cst_10 = arith.constant 2.000000e+01 : f32
    %26 = vector.broadcast %cst_10 : f32 to vector<8x8xf32>
    %27 = arith.subf %25, %26 : vector<8x8xf32>
    %c8_i32 = arith.constant 8 : i32
    %28 = arith.muli %arg0, %c8_i32 : i32
    %29 = tpu.iota {dimensions = array<i32: 0>} : vector<8x8xi32>
    %30 = vector.broadcast %28 : i32 to vector<8x8xi32>
    %31 = arith.addi %30, %29 : vector<8x8xi32>
    %c8_i32_11 = arith.constant 8 : i32
    %32 = arith.muli %arg1, %c8_i32_11 : i32
    %33 = tpu.iota {dimensions = array<i32: 1>} : vector<8x8xi32>
    %34 = vector.broadcast %32 : i32 to vector<8x8xi32>
    %35 = arith.addi %34, %33 : vector<8x8xi32>
    %36 = arith.cmpi ne, %31, %35 : vector<8x8xi32>
    %c8_i32_12 = arith.constant 8 : i32
    %37 = vector.broadcast %c8_i32_12 : i32 to vector<8x8xi32>
    %38 = arith.cmpi slt, %35, %37 : vector<8x8xi32>
    %39 = arith.andi %36, %38 : vector<8x8xi1>
    %c0_13 = arith.constant 0 : index
    %c0_14 = arith.constant 0 : index
    %40 = vector.load %arg4[%c0_13, %c0_14] : memref<8x1xi32, #tpu.memory_space<vmem>>, vector<8x1xi32>
    %c0_15 = arith.constant 0 : index
    %c0_16 = arith.constant 0 : index
    %41 = vector.load %arg5[%c0_15, %c0_16] : memref<1x8xi32, #tpu.memory_space<vmem>>, vector<1x8xi32>
    %42 = vector.broadcast %40 : vector<8x1xi32> to vector<8x8xi32>
    %43 = vector.broadcast %41 : vector<1x8xi32> to vector<8x8xi32>
    %44 = arith.cmpi eq, %42, %43 : vector<8x8xi32>
    %45 = arith.andi %44, %39 : vector<8x8xi1>
    %46 = math.exp %27 : vector<8x8xf32>
    %cst_17 = arith.constant 0.000000e+00 : f32
    %47 = vector.broadcast %cst_17 : f32 to vector<8x8xf32>
    %48 = arith.select %39, %46, %47 : vector<8x8xi1>, vector<8x8xf32>
    %c0_18 = arith.constant 0 : index
    %c0_19 = arith.constant 0 : index
    %49 = vector.load %arg7[%c0_18, %c0_19] : memref<8x1xf32, #tpu.memory_space<vmem>>, vector<8x1xf32>
    %cst_20 = arith.constant dense<0.000000e+00> : vector<8xf32>
    %50 = vector.multi_reduction <add>, %48, %cst_20 [1] : vector<8x8xf32> to vector<8xf32>
    %51 = vector.shape_cast %50 : vector<8xf32> to vector<8x1xf32>
    %52 = arith.addf %49, %51 : vector<8x1xf32>
    %c0_21 = arith.constant 0 : index
    %c0_22 = arith.constant 0 : index
    %53 = vector.load %arg7[%c0_21, %c0_22] : memref<8x1xf32, #tpu.memory_space<vmem>>, vector<8x1xf32>
    tpu.vector_store %arg7[%c0_21, %c0_22], %52 {strides = array<i32>} : memref<8x1xf32, #tpu.memory_space<vmem>>, vector<8x1xf32>,
    %c0_23 = arith.constant 0 : index
    %c0_24 = arith.constant 0 : index
    %54 = vector.load %arg8[%c0_23, %c0_24] : memref<8x1xf32, #tpu.memory_space<vmem>>, vector<8x1xf32>
    %cst_25 = arith.constant 0.000000e+00 : f32
    %55 = vector.broadcast %cst_25 : f32 to vector<8x8xf32>
    %56 = arith.select %45, %27, %55 : vector<8x8xi1>, vector<8x8xf32>
    %cst_26 = arith.constant dense<0.000000e+00> : vector<8xf32>
    %57 = vector.multi_reduction <add>, %56, %cst_26 [1] : vector<8x8xf32> to vector<8xf32>
    %58 = vector.shape_cast %57 : vector<8xf32> to vector<8x1xf32>
    %59 = arith.addf %54, %58 : vector<8x1xf32>
    %c0_27 = arith.constant 0 : index
    %c0_28 = arith.constant 0 : index
    %60 = vector.load %arg8[%c0_27, %c0_28] : memref<8x1xf32, #tpu.memory_space<vmem>>, vector<8x1xf32>
    tpu.vector_store %arg8[%c0_27, %c0_28], %59 {strides = array<i32>} : memref<8x1xf32, #tpu.memory_space<vmem>>, vector<8x1xf32>,
    %c0_29 = arith.constant 0 : index
    %c0_30 = arith.constant 0 : index
    %61 = vector.load %arg9[%c0_29, %c0_30] : memref<8x1xf32, #tpu.memory_space<vmem>>, vector<8x1xf32>
    %62 = arith.extui %45 : vector<8x8xi1> to vector<8x8xi32>
    %63 = arith.sitofp %62 : vector<8x8xi32> to vector<8x8xf32>
    %cst_31 = arith.constant dense<0.000000e+00> : vector<8xf32>
    %64 = vector.multi_reduction <add>, %63, %cst_31 [1] : vector<8x8xf32> to vector<8xf32>
    %65 = vector.shape_cast %64 : vector<8xf32> to vector<8x1xf32>
    %66 = arith.addf %61, %65 : vector<8x1xf32>
    %c0_32 = arith.constant 0 : index
    %c0_33 = arith.constant 0 : index
    %67 = vector.load %arg9[%c0_32, %c0_33] : memref<8x1xf32, #tpu.memory_space<vmem>>, vector<8x1xf32>
    tpu.vector_store %arg9[%c0_32, %c0_33], %66 {strides = array<i32>} : memref<8x1xf32, #tpu.memory_space<vmem>>, vector<8x1xf32>,
    %c0_i32_34 = arith.constant 0 : i32
    %68 = arith.cmpi eq, %arg1, %c0_i32_34 : i32
    %69 = arith.extui %68 : i1 to i32
    %c0_i32_35 = arith.constant 0 : i32
    %70 = arith.cmpi ne, %69, %c0_i32_35 : i32
    scf.if %70 {
      %c0_36 = arith.constant 0 : index
      %c0_37 = arith.constant 0 : index
      %71 = vector.load %arg9[%c0_36, %c0_37] : memref<8x1xf32, #tpu.memory_space<vmem>>, vector<8x1xf32>
      %cst_38 = arith.constant 0.000000e+00 : f32
      %72 = vector.broadcast %cst_38 : f32 to vector<8x1xf32>
      %73 = arith.cmpf ogt, %71, %72 : vector<8x1xf32>
      %cst_39 = arith.constant 1.000000e+00 : f32
      %74 = vector.broadcast %cst_39 : f32 to vector<8x1xf32>
      %75 = arith.select %73, %71, %74 : vector<8x1xi1>, vector<8x1xf32>
      %c0_40 = arith.constant 0 : index
      %c0_41 = arith.constant 0 : index
      %76 = vector.load %arg8[%c0_40, %c0_41] : memref<8x1xf32, #tpu.memory_space<vmem>>, vector<8x1xf32>
      %77 = tpu.reciprocal %75 : vector<8x1xf32> -> vector<8x1xf32>
      %78 = arith.mulf %76, %77 : vector<8x1xf32>
      %c0_42 = arith.constant 0 : index
      %c0_43 = arith.constant 0 : index
      %79 = vector.load %arg7[%c0_42, %c0_43] : memref<8x1xf32, #tpu.memory_space<vmem>>, vector<8x1xf32>
      %80 = math.log %79 : vector<8x1xf32>
      %81 = arith.subf %80, %78 : vector<8x1xf32>
      %cst_44 = arith.constant 0.000000e+00 : f32
      %82 = vector.broadcast %cst_44 : f32 to vector<8x1xf32>
      %83 = arith.cmpf ogt, %71, %82 : vector<8x1xf32>
      %cst_45 = arith.constant 0.000000e+00 : f32
      %84 = vector.broadcast %cst_45 : f32 to vector<8x1xf32>
      %85 = arith.select %83, %81, %84 : vector<8x1xi1>, vector<8x1xf32>
      %c0_46 = arith.constant 0 : index
      %c0_47 = arith.constant 0 : index
      %86 = vector.load %arg6[%c0_46, %c0_47] : memref<8x1xf32, #tpu.memory_space<vmem>>, vector<8x1xf32>
      tpu.vector_store %arg6[%c0_46, %c0_47], %85 {strides = array<i32>} : memref<8x1xf32, #tpu.memory_space<vmem>>, vector<8x1xf32>,
    } else {
    }
    return
  }
  func.func @transform_0(%arg0: i32, %arg1: i32) -> (i32, i32) {
    %c0_i32 = arith.constant 0 : i32
    %c0_i32_0 = arith.constant 0 : i32
    return %arg0, %c0_i32 : i32, i32
  }
  func.func @transform_1(%arg0: i32, %arg1: i32) -> (i32, i32) {
    %c0_i32 = arith.constant 0 : i32
    %c0_i32_0 = arith.constant 0 : i32
    return %arg1, %c0_i32 : i32, i32
  }
  func.func @transform_2(%arg0: i32, %arg1: i32) -> (i32, i32) {
    %c0_i32 = arith.constant 0 : i32
    %c0_i32_0 = arith.constant 0 : i32
    return %arg0, %c0_i32 : i32, i32
  }
  func.func @transform_3(%arg0: i32, %arg1: i32) -> (i32, i32) {
    %c0_i32 = arith.constant 0 : i32
    %c0_i32_0 = arith.constant 0 : i32
    return %c0_i32, %arg1 : i32, i32
  }
  func.func @transform_4(%arg0: i32, %arg1: i32) -> (i32, i32) {
    %c0_i32 = arith.constant 0 : i32
    %c0_i32_0 = arith.constant 0 : i32
    return %arg0, %c0_i32 : i32, i32
  }
}

</mosaic_0001>

<bundles_post_ra>
// kernel: tpu_custom_call.1
= control target key start
LH: loop header
LB: loop body
LE: loop exit
PB: predicated region body
PF: predicated region fallthrough
CT: control target
= control target key end

     0   :  { %9 = vsyncpa [#allocation6], 0  ;;  %s255_s15 = smov [#allocation5]   ;;  %s338_s0 = inlined_call_operand.vmem [shape: f32[8,32], index: 0, kind: input, shape index: {}]   ;;  %s339_s1 = inlined_call_operand.hbm [shape: f32[8,32], index: 1, kind: input, shape index: {}]   ;;  %s340_s2 = inlined_call_operand.vmem [shape: s32[8,1], index: 2, kind: input, shape index: {}]   ;;  %s341_s3 = inlined_call_operand.vmem [shape: s32[1,8], index: 3, kind: input, shape index: {}]   ;;  %s342_s4 = inlined_call_operand.vmem [shape: f32[8,1], index: 4, kind: output, shape index: {}]  }
   0x1   :  { %s18_s16 = sshll.u32 %s255_s15, 4  ;;  %s231_s19 = scalar_lea.hbm %s339_s1, 128  ;;  %s19_s16 = int_to_ptr.vmem [resolvable:$true] %s18_s16 }
   0x2   :  { %p232_p0 = scmp.ne.s32.totalorder %s339_s1, %s231_s19  ;;  %p235_p1 = scmp.lt.u32.totalorder %s231_s19, %s339_s1 }
   0x4   :  { %p237_p2 = pnand %p235_p1, %p232_p0 }
   0x6   :  { %240 = shalt.err (!%p237_p2)
}
   0x7   :  { %s241_s24 = scalar_lea.vmem %s19_s16, 128  ;;  %p246_p4 = scmp.lt.s32.totalorder %s19_s16, %s19_s16 }
   0x8   :  { %p242_p3 = scmp.ne.s32.totalorder %s19_s16, %s241_s24  ;;  %p247_p5 = scmp.lt.s32.totalorder %s241_s24, %s241_s24 }
   0xa   :  { %p248_p6 = por %p247_p5, %p246_p4 }
   0xc   :  { %p249_p7 = pnand %p248_p6, %p242_p3 }
   0xe   :  { %252 = shalt.err (!%p249_p7)
}
   0xf   :  { %21 = dma.hbm_to_vmem [thread:$0]  %s339_s1, 128, %s19_s16, [#allocation6]  }
  0x10   :  { %253 = dma.done.wait [#allocation6], 128  }
  0x11   :  { %254 = vsyncadd [#allocation6], 4294967168  ;;  %v38_v0 = vld [vmem:[#allocation5] sm:$0xff]  ;;  %vm40_vm0 = vcmask 261120   ;;  %v37_v1 = vld [vmem:[%s338_s0] sm:$0xff]  ;;  %v256_v6 = vmov 0.0   ;;  %v134_v19 = vlaneseq }
  0x12   :  { %v44_v2 = vmul.f32 %v38_v0, %v38_v0  ;;  %v39_v3 = vmul.f32 %v37_v1, %v37_v1  ;;  %210 = vmatprep.subr.mxu0 %v256_v6  ;;  %vm257_vm1 = vmmov 0   ;;  %v146_v7 = vld [vmem:[%s340_s2] sm:$0xff]  ;;  %v258_v8 = vmov 0  }
  0x13   :  { %212 = vmatprep.mubr.msk.f32.mxu0 %vm257_vm1, %v256_v6  ;;  %219 = vset.pattern.permute.xlu1 %v258_v8  ;;  %v135_v20 = vshrl.u32 %v134_v19, 7  ;;  %v140_v21 = vand.u32 127, %v134_v19  ;;  %v206_v22 = vld [vmem:[%s341_s3] ss:$0 sm:$0xff]  ;;  %vm161_vm7 = vcmask 64512   ;;  %vm33_vm8 = vcmask 7168  }
  0x14   :  { %v45_v4 = vsel %vm40_vm0, %v44_v2, 0.0  ;;  %v41_v5 = vsel %vm40_vm0, %v39_v3, 0.0  ;;  %220 = vset.pattern.permute.xlu0 %v258_v8  ;;  %149 = vperm.xlu1 %219, %v146_v7   ;;  %36 = vst.msk [vmem:[#allocation4] sm:$0xff] %vm33_vm8, %v256_v6  ;;  %34 = vst.msk [vmem:[#allocation2] sm:$0xff] %vm33_vm8, %v256_v6 }
  0x15   :  { %46 = vadd.xlane.f32.xlu0 %v45_v4  ;;  %vm143_vm2 = vcmp.ne.s32.totalorder %v135_v20, %v140_v21  ;;  %vm144_vm3 = vcmp.lt.s32.totalorder %v140_v21, 8  ;;  %35 = vst.msk [vmem:[#allocation3] sm:$0xff] %vm33_vm8, %v256_v6 }
  0x16   :  { %vm309_vm4 = vmand %vm143_vm2, %vm144_vm3 }
  0x19   :  { %42 = vadd.xlane.f32.xlu0 %v41_v5 }
  0x1b   :  { %v175_v36 = vld [vmem:[#allocation4] sm:$0xff]  ;;  %v160_v40 = vld [vmem:[#allocation2] sm:$0xff] }
  0x1c   :  { %v168_v44 = vld [vmem:[#allocation3] sm:$0xff] }
  0x93   :  { %v150_v23 = vpop.permute.xlu1 %149 }
  0x94   :  { %vm155_vm5 = vcmp.eq.s32.totalorder %v150_v23, %v206_v22 }
  0x95   :  { %vm315_vm6 = vmand %vm155_vm5, %vm309_vm4 }
  0x96   :  { %v207_v26 = vsel %vm315_vm6, 1.0, %v256_v6 }
  0x97   :  { %v178_v27 = vsel %vm161_vm7, %v207_v26, 0.0 }
  0x98   :  { %179 = vadd.xlane.f32.xlu1 %v178_v27 }
  0xa2   :  { %v47_v9 = vpop.xlane.xlu0 %46 }
  0xa3   :  { %221 = vrsqrt.f32 %v47_v9 }
  0xa6   :  { %v43_v10 = vpop.xlane.xlu0 %42 }
  0xa7   :  { %223 = vrsqrt.f32 %v43_v10 }
  0xad   :  { %v222_v11 = vpop.eup %221 }
  0xae   :  { %v52_v12 = vmin.f32 %v222_v11, 1e+12 }
  0xb0   :  { %v53_v13 = vmul.f32 4.472136, %v52_v12 }
  0xb1   :  { %v224_v14 = vpop.eup %223 }
  0xb2   :  { %v49_v15 = vmin.f32 %v224_v14, 1e+12  ;;  %v55_v16 = vmul.f32 %v53_v13, %v38_v0 }
  0xb4   :  { %v50_v17 = vmul.f32 4.472136, %v49_v15  ;;  %211 = vmatpush3.xpose.msk.msra.mxu0 %vm40_vm0, %v55_v16 }
  0xb6   :  { %v54_v18 = vmul.f32 %v50_v17, %v37_v1 }
  0xb8   :  { %213 = vmatmul.mubr.msk.f32.vlgmr.msra.gmra.mrb[0].mxu0 %vm40_vm0, %v54_v18 }
 0x125   :  { %v180_v37 = vpop.xlane.xlu1 %179 }
 0x126   :  { %v181_v39 = vadd.f32 %v180_v37, %v175_v36 }
 0x128   :  { %182 = vst.msk [vmem:[#allocation4] sm:$0xff] %vm33_vm8, %v181_v39 }
 0x12f   :  { %v186_v41 = vld [vmem:[#allocation4] sm:$0xff] }
 0x130   :  { %vm187_vm9 = vcmp.gt.f32.partialorder %v186_v41, 0.0 }
 0x131   :  { %v188_v47 = vsel %vm187_vm9, %v186_v41, 1.0 }
 0x18b   :  { %v128_v28 = vpop.f32.mrb[0].mxu0 }
 0x18c   :  { %v205_v29 = vadd.f32 -20.0, %v128_v28  ;;  %v214_v30 = vpop.f32.mrb[1].mxu0 }
 0x18e   :  { %v157_v31 = vmul.f32 1.442695, %v205_v29  ;;  %v169_v35 = vsel %vm315_vm6, %v205_v29, 0.0 }
 0x18f   :  { %v170_v38 = vsel %vm161_vm7, %v169_v35, 0.0 }
 0x190   :  { %225 = vpow2.f32 %v157_v31 }
 0x191   :  { %227 = vrcp.f32 %v188_v47 }
 0x19a   :  { %v226_v32 = vpop.eup %225 }
 0x19b   :  { %v159_v33 = vsel %vm309_vm4, %v226_v32, 0.0  ;;  %v228_v49 = vpop.eup %227 }
 0x19c   :  { %v162_v34 = vsel %vm161_vm7, %v159_v33, 0.0 }
 0x19d   :  { %163 = vadd.xlane.f32.xlu0 %v162_v34 }
 0x1a1   :  { %171 = vadd.xlane.f32.xlu0 %v170_v38 }
 0x22a   :  { %v164_v42 = vpop.xlane.xlu0 %163 }
 0x22b   :  { %v165_v43 = vadd.f32 %v164_v42, %v160_v40 }
 0x22d   :  { %167 = vst.msk [vmem:[#allocation2] sm:$0xff] %vm33_vm8, %v165_v43 }
 0x22e   :  { %v172_v45 = vpop.xlane.xlu0 %171 }
 0x22f   :  { %v173_v46 = vadd.f32 %v172_v45, %v168_v44 }
 0x231   :  { %174 = vst.msk [vmem:[#allocation3] sm:$0xff] %vm33_vm8, %v173_v46 }
 0x234   :  { %v192_v48 = vld [vmem:[#allocation2] sm:$0xff] }
 0x235   :  { %229 = vlog2.f32 %v192_v48 }
 0x238   :  { %v189_v50 = vld [vmem:[#allocation3] sm:$0xff] }
 0x239   :  { %v191_v53 = vmul.f32 %v228_v49, %v189_v50 }
 0x23f   :  { %v230_v51 = vpop.eup %229 }
 0x240   :  { %v194_v52 = vmul.f32 0.6931472, %v230_v51 }
 0x242   :  { %v195_v54 = vsub.f32 %v194_v52, %v191_v53 }
 0x244   :  { %v196_v55 = vsel %vm187_vm9, %v195_v54, 0.0 }
 0x245   :  { %197 = vst.msk [vmem:[%s342_s4] sm:$0xff] %vm33_vm8, %v196_v55 }
 0x246   :  { %202 = vsyncpa [#allocation6], 1 }

</bundles_post_ra>
